<compile_context>
chip_gen: v7x
topology: tpu7x:2x2x1
jax: 0.10.0
libtpu: 0.0.40
codegen_flags: <defaults>
</compile_context>

<pallas_src>
import functools
import math

import jax
import jax.numpy as jnp
from jax.experimental import pallas as pl
from jax.experimental.pallas import tpu as pltpu


def vae_sigmoid_kernel(x_ref,
                       w1_ref, b1_ref,
                       wm3_ref, bm3_ref,
                       w4_ref, b4_ref,
                       out_ref):
    # x arrives f32 (single HBM read of the source tensor); cast to bf16 here
    # so the dots run bf16 on the MXU with f32 accumulation.
    x = x_ref[...].astype(jnp.bfloat16)                         # (TB, input_dim)

    # encode: h = relu(fc1(x))
    h = jnp.dot(x, w1_ref[...], preferred_element_type=jnp.float32) + b1_ref[...]
    h = jnp.maximum(h, 0.0)

    # fused mu -> fc3 (linear-of-linear): h2 = relu(h @ (wmu@w3) + (bmu@w3+b3))
    h2 = jnp.dot(h.astype(jnp.bfloat16), wm3_ref[...],
                 preferred_element_type=jnp.float32) + bm3_ref[...]
    h2 = jnp.maximum(h2, 0.0)

    # decode: xr = sigmoid(fc4(h2)); sigmoid via tanh = one EUP op, exact.
    logits = jnp.dot(h2.astype(jnp.bfloat16), w4_ref[...],
                     preferred_element_type=jnp.float32) + b4_ref[...]
    out_ref[...] = 0.5 * jnp.tanh(0.5 * logits) + 0.5


def _round_up(x, m):
    return (x + m - 1) // m * m


@functools.partial(jax.jit, static_argnames=("nc", "w"))
def vae_sigmoid_forward(x_nchw, prep, nc, w):
    """prep: output of prepare_params() — bf16 weights, f32 biases, fused mu/fc3."""
    B = x_nchw.shape[0]
    input_dim = nc * w * w

    # Batch tile: multiple of 8 sublanes (unmasked f32 stores), cap 512 rows.
    B8 = _round_up(B, 8)
    TB = min(512, B8)
    # If the batch permits >=2 tiles, split so the "parallel" grid axis can
    # shard across both v7x TensorCores (no effect on v5e/v6e single-TC).
    if B8 // TB < 2 and B8 >= 16:
        TB = _round_up(B8 // 2, 8)
    B_pad = _round_up(B, TB)

    x_flat = x_nchw.reshape(B, input_dim)                       # stays f32
    if B_pad != B:
        x_flat = jnp.pad(x_flat, ((0, B_pad - B), (0, 0)))

    def resident(arr):
        # Full-array block, constant index map -> stays VMEM-resident across
        # all batch tiles (weights/biases not re-fetched per grid step).
        nd = arr.ndim
        return pl.BlockSpec(arr.shape, lambda i, _nd=nd: (0,) * _nd)

    out_flat = pl.pallas_call(
        vae_sigmoid_kernel,
        out_shape=jax.ShapeDtypeStruct((B_pad, input_dim), jnp.float32),
        grid=(B_pad // TB,),
        in_specs=[
            pl.BlockSpec((TB, input_dim), lambda i: (i, 0)),    # x batch tile
            resident(prep["w1"]), resident(prep["b1"]),
            resident(prep["wm3"]), resident(prep["bm3"]),
            resident(prep["w4"]), resident(prep["b4"]),
        ],
        out_specs=pl.BlockSpec((TB, input_dim), lambda i: (i, 0)),
        compiler_params=pltpu.CompilerParams(
            dimension_semantics=("parallel",),
            vmem_limit_bytes=64 << 20),
    )(x_flat, prep["w1"], prep["b1"], prep["wm3"], prep["bm3"],
      prep["w4"], prep["b4"])

    return out_flat[:B].reshape(B, nc, w, w)


def init_params(key, input_dim, mid_dim, latent_dim):
    """Deterministic init mirroring nn.Linear default (uniform +/- 1/sqrt(fan_in)).
    Weights stored as (in, out). sigma layer kept for parity with the module's
    parameter set but never used by forward."""
    def linear(k, fan_in, fan_out):
        kw, kb = jax.random.split(k)
        bound = 1.0 / math.sqrt(fan_in)
        wgt = jax.random.uniform(kw, (fan_in, fan_out), jnp.float32, -bound, bound)
        b = jax.random.uniform(kb, (1, fan_out), jnp.float32, -bound, bound)
        return wgt, b

    k1, k2, k3, k4, k5 = jax.random.split(key, 5)
    w1, b1 = linear(k1, input_dim, mid_dim)       # fc1
    wmu, bmu = linear(k2, mid_dim, latent_dim)    # mu
    wsig, bsig = linear(k3, mid_dim, latent_dim)  # sigma (unused in forward)
    w3, b3 = linear(k4, latent_dim, mid_dim)      # fc3
    w4, b4 = linear(k5, mid_dim, input_dim)       # fc4
    return dict(w1=w1, b1=b1, wmu=wmu, bmu=bmu, wsig=wsig, bsig=bsig,
                w3=w3, b3=b3, w4=w4, b4=b4)


def prepare_params(params):
    """One-time param prep: fuse mu->fc3 (both linear, no nonlinearity between)
    in f32, then cast weights to bf16 and biases to f32.  Call ONCE, reuse."""
    wm3 = jnp.dot(params["wmu"], params["w3"],
                  preferred_element_type=jnp.float32)            # (mid, mid)
    bm3 = jnp.dot(params["bmu"], params["w3"],
                  preferred_element_type=jnp.float32) + params["b3"]
    return dict(
        w1=params["w1"].astype(jnp.bfloat16),
        b1=params["b1"].astype(jnp.float32),
        wm3=wm3.astype(jnp.bfloat16),
        bm3=bm3.astype(jnp.float32),
        w4=params["w4"].astype(jnp.bfloat16),
        b4=params["b4"].astype(jnp.float32),
    )


def reference_forward(x_nchw, prep, nc, w):
    """Pure-JAX reference mirroring the kernel's precision (bf16 operands,
    f32 accumulation, fused mu->fc3 weight, exact sigmoid)."""
    B = x_nchw.shape[0]
    x = x_nchw.reshape(B, nc * w * w).astype(jnp.bfloat16)
    h = jnp.dot(x, prep["w1"], preferred_element_type=jnp.float32) + prep["b1"]
    h = jnp.maximum(h, 0.0)
    h2 = jnp.dot(h.astype(jnp.bfloat16), prep["wm3"],
                 preferred_element_type=jnp.float32) + prep["bm3"]
    h2 = jnp.maximum(h2, 0.0)
    logits = jnp.dot(h2.astype(jnp.bfloat16), prep["w4"],
                     preferred_element_type=jnp.float32) + prep["b4"]
    return jax.nn.sigmoid(logits).reshape(B, nc, w, w)


if __name__ == "__main__":
    # cfg: N_CHANNELS=4, IMG_SIZE=16, EMBEDDING_DIM=32
    NC, W, EMB = 4, 16, 32
    INPUT_DIM = NC * W * W        # 1024
    MID = round(EMB / 2)          # 16
    LATENT = EMB                  # 32
    B = 2

    key = jax.random.PRNGKey(0)
    kx, kp = jax.random.split(key)
    x = jax.random.normal(kx, (B, NC, W, W), dtype=jnp.float32)
    params = init_params(kp, INPUT_DIM, MID, LATENT)
    prep = prepare_params(params)          # one-time fusion + bf16 cast

    out = vae_sigmoid_forward(x, prep, NC, W)
    out = jax.block_until_ready(out)

    ref = reference_forward(x, prep, NC, W)
    assert out.shape == (B, NC, W, W)
    assert jnp.allclose(out, ref, atol=1e-2, rtol=1e-2), \
        float(jnp.max(jnp.abs(out - ref)))

    print("KERNEL_OK")
</pallas_src>

<mosaic_0001>
module attributes {stable_mosaic.version = 11 : i64} {
  func.func @vae_sigmoid_kernel(%arg0: i32, %arg1: memref<8x1024xf32, #tpu.memory_space<vmem>>, %arg2: memref<1024x16xbf16, #tpu.memory_space<vmem>>, %arg3: memref<1x16xf32, #tpu.memory_space<vmem>>, %arg4: memref<16x16xbf16, #tpu.memory_space<vmem>>, %arg5: memref<1x16xf32, #tpu.memory_space<vmem>>, %arg6: memref<16x1024xbf16, #tpu.memory_space<vmem>>, %arg7: memref<1x1024xf32, #tpu.memory_space<vmem>>, %arg8: memref<8x1024xf32, #tpu.memory_space<vmem>>) attributes {dimension_semantics = [#tpu.dimension_semantics<parallel>], iteration_bounds = array<i64: 1>, scalar_prefetch = 0 : i64, scratch_operands = 0 : i64, tpu.core_type = #tpu.core_type<tc>, window_params = [{transform_indices = @transform_0, window_bounds = array<i64: 8, 1024>}, {pipeline_mode = #tpu.pipeline_mode<synchronous>, transform_indices = @transform_1, window_bounds = array<i64: 1024, 16>}, {pipeline_mode = #tpu.pipeline_mode<synchronous>, transform_indices = @transform_2, window_bounds = array<i64: 1, 16>}, {pipeline_mode = #tpu.pipeline_mode<synchronous>, transform_indices = @transform_3, window_bounds = array<i64: 16, 16>}, {pipeline_mode = #tpu.pipeline_mode<synchronous>, transform_indices = @transform_4, window_bounds = array<i64: 1, 16>}, {pipeline_mode = #tpu.pipeline_mode<synchronous>, transform_indices = @transform_5, window_bounds = array<i64: 16, 1024>}, {pipeline_mode = #tpu.pipeline_mode<synchronous>, transform_indices = @transform_6, window_bounds = array<i64: 1, 1024>}, {transform_indices = @transform_7, window_bounds = array<i64: 8, 1024>}]} {
    %c0 = arith.constant 0 : index
    %c0_0 = arith.constant 0 : index
    %0 = vector.load %arg1[%c0, %c0_0] : memref<8x1024xf32, #tpu.memory_space<vmem>>, vector<8x1024xf32>
    %1 = arith.truncf %0 : vector<8x1024xf32> to vector<8x1024xbf16>
    %c0_1 = arith.constant 0 : index
    %c0_2 = arith.constant 0 : index
    %2 = vector.load %arg2[%c0_1, %c0_2] : memref<1024x16xbf16, #tpu.memory_space<vmem>>, vector<1024x16xbf16>
    %cst = arith.constant dense<0.000000e+00> : vector<8x16xf32>
    %3 = tpu.matmul %1, %2, %cst {dimension_numbers = #tpu.dot_dimension_numbers<[1], [0], [0], [1], [0, 0, 1, 1], [], []>} : vector<8x1024xbf16>, vector<1024x16xbf16>, vector<8x16xf32> -> vector<8x16xf32>
    %c0_3 = arith.constant 0 : index
    %c0_4 = arith.constant 0 : index
    %4 = vector.load %arg3[%c0_3, %c0_4] : memref<1x16xf32, #tpu.memory_space<vmem>>, vector<1x16xf32>
    %5 = vector.broadcast %4 : vector<1x16xf32> to vector<8x16xf32>
    %6 = arith.addf %3, %5 : vector<8x16xf32>
    %cst_5 = arith.constant 0.000000e+00 : f32
    %7 = vector.broadcast %cst_5 : f32 to vector<8x16xf32>
    %8 = arith.maximumf %6, %7 : vector<8x16xf32>
    %9 = arith.truncf %8 : vector<8x16xf32> to vector<8x16xbf16>
    %c0_6 = arith.constant 0 : index
    %c0_7 = arith.constant 0 : index
    %10 = vector.load %arg4[%c0_6, %c0_7] : memref<16x16xbf16, #tpu.memory_space<vmem>>, vector<16x16xbf16>
    %cst_8 = arith.constant dense<0.000000e+00> : vector<8x16xf32>
    %11 = tpu.matmul %9, %10, %cst_8 {dimension_numbers = #tpu.dot_dimension_numbers<[1], [0], [0], [1], [0, 0, 1, 1], [], []>} : vector<8x16xbf16>, vector<16x16xbf16>, vector<8x16xf32> -> vector<8x16xf32>
    %c0_9 = arith.constant 0 : index
    %c0_10 = arith.constant 0 : index
    %12 = vector.load %arg5[%c0_9, %c0_10] : memref<1x16xf32, #tpu.memory_space<vmem>>, vector<1x16xf32>
    %13 = vector.broadcast %12 : vector<1x16xf32> to vector<8x16xf32>
    %14 = arith.addf %11, %13 : vector<8x16xf32>
    %cst_11 = arith.constant 0.000000e+00 : f32
    %15 = vector.broadcast %cst_11 : f32 to vector<8x16xf32>
    %16 = arith.maximumf %14, %15 : vector<8x16xf32>
    %17 = arith.truncf %16 : vector<8x16xf32> to vector<8x16xbf16>
    %c0_12 = arith.constant 0 : index
    %c0_13 = arith.constant 0 : index
    %18 = vector.load %arg6[%c0_12, %c0_13] : memref<16x1024xbf16, #tpu.memory_space<vmem>>, vector<16x1024xbf16>
    %cst_14 = arith.constant dense<0.000000e+00> : vector<8x1024xf32>
    %19 = tpu.matmul %17, %18, %cst_14 {dimension_numbers = #tpu.dot_dimension_numbers<[1], [0], [0], [1], [0, 0, 1, 1], [], []>} : vector<8x16xbf16>, vector<16x1024xbf16>, vector<8x1024xf32> -> vector<8x1024xf32>
    %c0_15 = arith.constant 0 : index
    %c0_16 = arith.constant 0 : index
    %20 = vector.load %arg7[%c0_15, %c0_16] : memref<1x1024xf32, #tpu.memory_space<vmem>>, vector<1x1024xf32>
    %21 = vector.broadcast %20 : vector<1x1024xf32> to vector<8x1024xf32>
    %22 = arith.addf %19, %21 : vector<8x1024xf32>
    %cst_17 = arith.constant 5.000000e-01 : f32
    %23 = vector.broadcast %cst_17 : f32 to vector<8x1024xf32>
    %24 = arith.mulf %23, %22 : vector<8x1024xf32>
    %25 = math.tanh %24 : vector<8x1024xf32>
    %cst_18 = arith.constant 5.000000e-01 : f32
    %26 = vector.broadcast %cst_18 : f32 to vector<8x1024xf32>
    %27 = arith.mulf %26, %25 : vector<8x1024xf32>
    %cst_19 = arith.constant 5.000000e-01 : f32
    %28 = vector.broadcast %cst_19 : f32 to vector<8x1024xf32>
    %29 = arith.addf %27, %28 : vector<8x1024xf32>
    %c0_20 = arith.constant 0 : index
    %c0_21 = arith.constant 0 : index
    %30 = vector.load %arg8[%c0_20, %c0_21] : memref<8x1024xf32, #tpu.memory_space<vmem>>, vector<8x1024xf32>
    tpu.vector_store %arg8[%c0_20, %c0_21], %29 {strides = array<i32>} : memref<8x1024xf32, #tpu.memory_space<vmem>>, vector<8x1024xf32>,
    return
  }
  func.func @transform_0(%arg0: i32) -> (i32, i32) {
    %c0_i32 = arith.constant 0 : i32
    %c0_i32_0 = arith.constant 0 : i32
    return %arg0, %c0_i32 : i32, i32
  }
  func.func @transform_1(%arg0: i32) -> (i32, i32) {
    %c0_i32 = arith.constant 0 : i32
    %c0_i32_0 = arith.constant 0 : i32
    %c0_i32_1 = arith.constant 0 : i32
    return %c0_i32, %c0_i32_0 : i32, i32
  }
  func.func @transform_2(%arg0: i32) -> (i32, i32) {
    %c0_i32 = arith.constant 0 : i32
    %c0_i32_0 = arith.constant 0 : i32
    %c0_i32_1 = arith.constant 0 : i32
    return %c0_i32, %c0_i32_0 : i32, i32
  }
  func.func @transform_3(%arg0: i32) -> (i32, i32) {
    %c0_i32 = arith.constant 0 : i32
    %c0_i32_0 = arith.constant 0 : i32
    %c0_i32_1 = arith.constant 0 : i32
    return %c0_i32, %c0_i32_0 : i32, i32
  }
  func.func @transform_4(%arg0: i32) -> (i32, i32) {
    %c0_i32 = arith.constant 0 : i32
    %c0_i32_0 = arith.constant 0 : i32
    %c0_i32_1 = arith.constant 0 : i32
    return %c0_i32, %c0_i32_0 : i32, i32
  }
  func.func @transform_5(%arg0: i32) -> (i32, i32) {
    %c0_i32 = arith.constant 0 : i32
    %c0_i32_0 = arith.constant 0 : i32
    %c0_i32_1 = arith.constant 0 : i32
    return %c0_i32, %c0_i32_0 : i32, i32
  }
  func.func @transform_6(%arg0: i32) -> (i32, i32) {
    %c0_i32 = arith.constant 0 : i32
    %c0_i32_0 = arith.constant 0 : i32
    %c0_i32_1 = arith.constant 0 : i32
    return %c0_i32, %c0_i32_0 : i32, i32
  }
  func.func @transform_7(%arg0: i32) -> (i32, i32) {
    %c0_i32 = arith.constant 0 : i32
    %c0_i32_0 = arith.constant 0 : i32
    return %arg0, %c0_i32 : i32, i32
  }
}

</mosaic_0001>

<bundles_post_ra>
// kernel: vae_sigmoid_forward.1
= control target key start
LH: loop header
LB: loop body
LE: loop exit
PB: predicated region body
PF: predicated region fallthrough
CT: control target
= control target key end

     0   :  { %12 = vsyncpa [#allocation3], 0  ;;  %s1802_s0 = inlined_call_operand.hbm [shape: f32[8,1024], index: 0, kind: input, shape index: {}]   ;;  %s1803_s1 = inlined_call_operand.hbm [shape: bf16[1024,16], index: 1, kind: input, shape index: {}]   ;;  %s1804_s2 = inlined_call_operand.hbm [shape: f32[1,16], index: 2, kind: input, shape index: {}]   ;;  %s1805_s3 = inlined_call_operand.hbm [shape: bf16[16,16], index: 3, kind: input, shape index: {}]   ;;  %s1806_s4 = inlined_call_operand.hbm [shape: f32[1,16], index: 4, kind: input, shape index: {}]   ;;  %s1807_s5 = inlined_call_operand.hbm [shape: bf16[16,1024], index: 5, kind: input, shape index: {}]   ;;  %s1808_s6 = inlined_call_operand.hbm [shape: f32[1,1024], index: 6, kind: input, shape index: {}]   ;;  %s1809_s7 = inlined_call_operand.hbm [shape: f32[8,1024], index: 7, kind: output, shape index: {}]  }
   0x1   :  { %13 = vsyncpa [#allocation6], 0 }
   0x2   :  { %14 = vsyncpa [#allocation9], 0 }
   0x3   :  { %15 = vsyncpa [#allocation12], 0 }
   0x4   :  { %16 = vsyncpa [#allocation4], 0  ;;  %s1646_s24 = smov [#allocation5]   ;;  %s1460_s28 = scalar_lea.hbm %s1803_s1, 8192 }
   0x5   :  { %s32_s25 = sshll.u32 %s1646_s24, 4  ;;  %p1461_p0 = scmp.ne.s32.totalorder %s1803_s1, %s1460_s28  ;;  %s33_s25 = int_to_ptr.vmem [resolvable:$true] %s32_s25 }
   0x6   :  { %p1464_p1 = scmp.lt.u32.totalorder %s1460_s28, %s1803_s1 }
   0x8   :  { %p1466_p2 = pnand %p1464_p1, %p1461_p0 }
   0xa   :  { %1469 = shalt.err (!%p1466_p2)
}
   0xb   :  { %s1470_s10 = scalar_lea.vmem %s33_s25, 8192  ;;  %p1475_p4 = scmp.lt.s32.totalorder %s33_s25, %s33_s25 }
   0xc   :  { %p1471_p3 = scmp.ne.s32.totalorder %s33_s25, %s1470_s10  ;;  %p1476_p5 = scmp.lt.s32.totalorder %s1470_s10, %s1470_s10 }
   0xe   :  { %p1477_p6 = por %p1476_p5, %p1475_p4 }
  0x10   :  { %p1478_p7 = pnand %p1477_p6, %p1471_p3 }
  0x12   :  { %1481 = shalt.err (!%p1478_p7)
}
  0x13   :  { %s1647_s11 = smov 64   ;;  %s1648_s12 = smov 4  }
  0x14   :  { %38 = dma.hbm_to_vmem [thread:$0]  %s1803_s1, 8192, %s33_s25, [#allocation6], %s1647_s11, %s1647_s11, %s1648_s12  }
  0x15   :  { %s1649_s15 = smov [#allocation8]   ;;  %s1650_s17 = smov [#allocation11]  }
  0x16   :  { %s54_s16 = sshll.u32 %s1649_s15, 4  ;;  %s76_s18 = sshll.u32 %s1650_s17, 4  ;;  %s55_s16 = int_to_ptr.vmem [resolvable:$true] %s54_s16  ;;  %s77_s18 = int_to_ptr.vmem [resolvable:$true] %s76_s18 }
  0x17   :  { %s1482_s21 = scalar_lea.hbm %s1805_s3, 128 }
  0x18   :  { %p1483_p8 = scmp.ne.s32.totalorder %s1805_s3, %s1482_s21  ;;  %p1486_p9 = scmp.lt.u32.totalorder %s1482_s21, %s1805_s3 }
  0x1a   :  { %p1488_p10 = pnand %p1486_p9, %p1483_p8 }
  0x1c   :  { %1491 = shalt.err (!%p1488_p10)
}
  0x1d   :  { %s1492_s1 = scalar_lea.vmem %s55_s16, 128  ;;  %p1497_p12 = scmp.lt.s32.totalorder %s55_s16, %s55_s16 }
  0x1e   :  { %p1493_p11 = scmp.ne.s32.totalorder %s55_s16, %s1492_s1  ;;  %p1498_p13 = scmp.lt.s32.totalorder %s1492_s1, %s1492_s1 }
  0x20   :  { %p1499_p0 = por %p1498_p13, %p1497_p12 }
  0x22   :  { %p1500_p1 = pnand %p1499_p0, %p1493_p11 }
  0x24   :  { %1503 = shalt.err (!%p1500_p1)
}
  0x25   :  { %60 = dma.hbm_to_vmem [thread:$0]  %s1805_s3, 128, %s55_s16, [#allocation9], %s1647_s11, %s1647_s11, %s1648_s12  }
  0x26   :  { %s1504_s30 = scalar_lea.hbm %s1807_s5, 1024 }
  0x27   :  { %p1505_p2 = scmp.ne.s32.totalorder %s1807_s5, %s1504_s30  ;;  %p1508_p3 = scmp.lt.u32.totalorder %s1504_s30, %s1807_s5 }
  0x29   :  { %p1510_p4 = pnand %p1508_p3, %p1505_p2 }
  0x2b   :  { %1513 = shalt.err (!%p1510_p4)
}
  0x2c   :  { %s1514_s14 = scalar_lea.vmem %s77_s18, 1024  ;;  %p1519_p6 = scmp.lt.s32.totalorder %s77_s18, %s77_s18 }
  0x2d   :  { %p1515_p5 = scmp.ne.s32.totalorder %s77_s18, %s1514_s14  ;;  %p1520_p7 = scmp.lt.s32.totalorder %s1514_s14, %s1514_s14 }
  0x2f   :  { %p1521_p8 = por %p1520_p7, %p1519_p6 }
  0x31   :  { %p1522_p9 = pnand %p1521_p8, %p1515_p5 }
  0x33   :  { %1525 = shalt.err (!%p1522_p9)
}
  0x34   :  { %s1651_s3 = smov 512   ;;  %s1652_s11 = smov 32  }
  0x35   :  { %82 = dma.hbm_to_vmem [thread:$0]  %s1807_s5, 1024, %s77_s18, [#allocation12], %s1651_s3, %s1651_s3, %s1652_s11  }
  0x36   :  { %s1653_s16 = smov [#allocation2]   ;;  %s1654_s19 = smov [#allocation7]  }
  0x37   :  { %s23_s17 = sshll.u32 %s1653_s16, 4  ;;  %s45_s20 = sshll.u32 %s1654_s19, 4  ;;  %s24_s17 = int_to_ptr.vmem [resolvable:$true] %s23_s17  ;;  %s46_s20 = int_to_ptr.vmem [resolvable:$true] %s45_s20 }
  0x38   :  { %s1526_s23 = scalar_lea.hbm %s1802_s0, 1024 }
  0x39   :  { %p1527_p10 = scmp.ne.s32.totalorder %s1802_s0, %s1526_s23  ;;  %p1530_p11 = scmp.lt.u32.totalorder %s1526_s23, %s1802_s0 }
  0x3b   :  { %p1532_p12 = pnand %p1530_p11, %p1527_p10 }
  0x3d   :  { %1535 = shalt.err (!%p1532_p12)
}
  0x3e   :  { %s1536_s5 = scalar_lea.vmem %s24_s17, 1024  ;;  %p1541_p0 = scmp.lt.s32.totalorder %s24_s17, %s24_s17 }
  0x3f   :  { %p1537_p13 = scmp.ne.s32.totalorder %s24_s17, %s1536_s5  ;;  %p1542_p1 = scmp.lt.s32.totalorder %s1536_s5, %s1536_s5 }
  0x41   :  { %p1543_p2 = por %p1542_p1, %p1541_p0 }
  0x43   :  { %p1544_p3 = pnand %p1543_p2, %p1537_p13 }
  0x45   :  { %1547 = shalt.err (!%p1544_p3)
}
  0x46   :  { %26 = dma.hbm_to_vmem [thread:$0]  %s1802_s0, 1024, %s24_s17, [#allocation3]  }
  0x47   :  { %s1548_s30 = scalar_lea.hbm %s1804_s2, 16 }
  0x48   :  { %p1549_p4 = scmp.ne.s32.totalorder %s1804_s2, %s1548_s30  ;;  %p1552_p5 = scmp.lt.u32.totalorder %s1548_s30, %s1804_s2 }
  0x4a   :  { %p1554_p6 = pnand %p1552_p5, %p1549_p4 }
  0x4c   :  { %1557 = shalt.err (!%p1554_p6)
}
  0x4d   :  { %s1558_s14 = scalar_lea.vmem %s46_s20, 16  ;;  %s1562_s3 = scalar_lea.vmem %s46_s20, 32 }
  0x4e   :  { %p1559_p7 = scmp.ne.s32.totalorder %s46_s20, %s1558_s14  ;;  %p1563_p8 = scmp.lt.s32.totalorder %s46_s20, %s46_s20 }
  0x4f   :  { %p1564_p9 = scmp.lt.s32.totalorder %s1562_s3, %s1558_s14 }
  0x51   :  { %p1565_p10 = por %p1564_p9, %p1563_p8 }
  0x53   :  { %p1566_p11 = pnand %p1565_p10, %p1559_p7 }
  0x55   :  { %1569 = shalt.err (!%p1566_p11)
}
  0x56   :  { %48 = dma.hbm_to_vmem [thread:$0]  %s1804_s2, 16, %s46_s20, [#allocation6]  }
  0x57   :  { %s1655_s12 = smov [#allocation10]   ;;  %s1656_s16 = smov [#allocation13]  }
  0x58   :  { %s67_s15 = sshll.u32 %s1655_s12, 4  ;;  %s89_s17 = sshll.u32 %s1656_s16, 4  ;;  %s68_s15 = int_to_ptr.vmem [resolvable:$true] %s67_s15  ;;  %s90_s17 = int_to_ptr.vmem [resolvable:$true] %s89_s17 }
  0x59   :  { %s1570_s22 = scalar_lea.hbm %s1806_s4, 16 }
  0x5a   :  { %p1571_p12 = scmp.ne.s32.totalorder %s1806_s4, %s1570_s22  ;;  %p1574_p13 = scmp.lt.u32.totalorder %s1570_s22, %s1806_s4 }
  0x5c   :  { %p1576_p0 = pnand %p1574_p13, %p1571_p12 }
  0x5e   :  { %1579 = shalt.err (!%p1576_p0)
}
  0x5f   :  { %s1580_s2 = scalar_lea.vmem %s68_s15, 16  ;;  %s1584_s20 = scalar_lea.vmem %s68_s15, 32 }
  0x60   :  { %p1581_p1 = scmp.ne.s32.totalorder %s68_s15, %s1580_s2  ;;  %p1585_p2 = scmp.lt.s32.totalorder %s68_s15, %s68_s15 }
  0x61   :  { %p1586_p3 = scmp.lt.s32.totalorder %s1584_s20, %s1580_s2 }
  0x63   :  { %p1587_p4 = por %p1586_p3, %p1585_p2 }
  0x65   :  { %p1588_p5 = pnand %p1587_p4, %p1581_p1 }
  0x67   :  { %1591 = shalt.err (!%p1588_p5)
}
  0x68   :  { %70 = dma.hbm_to_vmem [thread:$0]  %s1806_s4, 16, %s68_s15, [#allocation9]  }
  0x69   :  { %s1592_s28 = scalar_lea.hbm %s1808_s6, 128 }
  0x6a   :  { %p1593_p6 = scmp.ne.s32.totalorder %s1808_s6, %s1592_s28  ;;  %p1596_p7 = scmp.lt.u32.totalorder %s1592_s28, %s1808_s6 }
  0x6c   :  { %p1598_p8 = pnand %p1596_p7, %p1593_p6 }
  0x6e   :  { %1601 = shalt.err (!%p1598_p8)
}
  0x6f   :  { %s1602_s10 = scalar_lea.vmem %s90_s17, 128  ;;  %p1607_p10 = scmp.lt.s32.totalorder %s90_s17, %s90_s17 }
  0x70   :  { %p1603_p9 = scmp.ne.s32.totalorder %s90_s17, %s1602_s10  ;;  %p1608_p11 = scmp.lt.s32.totalorder %s1602_s10, %s1602_s10 }
  0x72   :  { %p1609_p12 = por %p1608_p11, %p1607_p10 }
  0x74   :  { %p1610_p13 = pnand %p1609_p12, %p1603_p9 }
  0x76   :  { %1613 = shalt.err (!%p1610_p13)
}
  0x77   :  { %92 = dma.hbm_to_vmem [thread:$0]  %s1808_s6, 128, %s90_s17, [#allocation12]  }
  0x78   :  { %1636 = dma.done.wait [#allocation3], 1024  }
  0x79   :  { %1637 = vsyncadd [#allocation3], 4294966272 }
  0x7a   :  { %1638 = dma.done.wait [#allocation6], 8208  }
  0x7b   :  { %1639 = vsyncadd [#allocation6], 4294959088 }
  0x7c   :  { %1640 = dma.done.wait [#allocation9], 144  }
  0x7d   :  { %1641 = vsyncadd [#allocation9], 4294967152 }
  0x7e   :  { %1642 = dma.done.wait [#allocation12], 1152  }
  0x7f   :  { %1643 = vsyncadd [#allocation12], 4294966144  ;;  %v1379_v0 = vld [vmem:[#allocation5 + $0x40] sm:$0xff]   ;;  %v1383_v4 = vld [vmem:[#allocation5 + $0x48] sm:$0xff]   ;;  %vm1658_vm0 = vmmov 0   ;;  %vm827_vm1 = vcmask 130048  }
  0x80   :  { %v1380_v1 = vld [vmem:[#allocation5 + $0xc0] sm:$0xff]   ;;  %1268 = vmatprep.subr.bf16.mxu0 %v1379_v0  ;;  %v1384_v5 = vld [vmem:[#allocation5 + $0xc8] sm:$0xff]   ;;  %v1387_v8 = vld [vmem:[#allocation5 + $0x50] sm:$0xff]   ;;  %s1660_s6 = smov [#allocation14]  }
  0x81   :  { %v1381_v2 = vld [vmem:[#allocation5] sm:$0xff]   ;;  %1290 = vmatprep.subr.bf16.mxu1 %v1380_v1  ;;  %v1385_v6 = vld [vmem:[#allocation5 + $0x8] sm:$0xff]   ;;  %v1388_v9 = vld [vmem:[#allocation5 + $0xd0] sm:$0xff]   ;;  %s1176_s14 = sshll.u32 %s1660_s6, 4  ;;  %s1177_s14 = int_to_ptr.vmem [resolvable:$true] %s1176_s14 }
  0x82   :  { %v1382_v3 = vld [vmem:[#allocation5 + $0x80] sm:$0xff]   ;;  %1269 = vmatpush3.bf16.msra.mxu0 %v1381_v2  ;;  %v1386_v7 = vld [vmem:[#allocation5 + $0x88] sm:$0xff]   ;;  %v1389_v10 = vld [vmem:[#allocation5 + $0x10] sm:$0xff]   ;;  %s1614_s3 = scalar_lea.vmem %s1177_s14, 1024  ;;  %p1619_p1 = scmp.lt.s32.totalorder %s1177_s14, %s1177_s14 }
  0x83   :  { %1291 = vmatpush3.bf16.msra.mxu1 %v1382_v3  ;;  %1270 = vmatprep.subr.bf16.mxu0 %v1383_v4  ;;  %v1390_v11 = vld [vmem:[#allocation5 + $0x90] sm:$0xff]   ;;  %v1391_v12 = vld [vmem:[#allocation5 + $0x58] sm:$0xff]   ;;  %v1395_v16 = vld [vmem:[#allocation5 + $0x60] sm:$0xff]   ;;  %p1615_p0 = scmp.ne.s32.totalorder %s1177_s14, %s1614_s3  ;;  %p1620_p2 = scmp.lt.s32.totalorder %s1614_s3, %s1614_s3 }
  0x84   :  { %1292 = vmatprep.subr.bf16.mxu1 %v1384_v5  ;;  %v1392_v13 = vld [vmem:[#allocation5 + $0xd8] sm:$0xff]   ;;  %v1396_v17 = vld [vmem:[#allocation5 + $0xe0] sm:$0xff]   ;;  %v1399_v20 = vld [vmem:[#allocation5 + $0x68] sm:$0xff]  }
  0x85   :  { %v1393_v14 = vld [vmem:[#allocation5 + $0x18] sm:$0xff]   ;;  %v1397_v18 = vld [vmem:[#allocation5 + $0x20] sm:$0xff]   ;;  %v1400_v21 = vld [vmem:[#allocation5 + $0xe8] sm:$0xff]   ;;  %p1621_p3 = por %p1620_p2, %p1619_p1 }
  0x86   :  { %1271 = vmatpush3.bf16.msra.mxu0 %v1385_v6  ;;  %v1394_v15 = vld [vmem:[#allocation5 + $0x98] sm:$0xff]   ;;  %v1398_v19 = vld [vmem:[#allocation5 + $0xa0] sm:$0xff]   ;;  %v1401_v22 = vld [vmem:[#allocation5 + $0x28] sm:$0xff]  }
  0x87   :  { %1293 = vmatpush3.bf16.msra.mxu1 %v1386_v7  ;;  %1272 = vmatprep.subr.bf16.mxu0 %v1387_v8  ;;  %v1402_v23 = vld [vmem:[#allocation5 + $0xa8] sm:$0xff]   ;;  %v1403_v24 = vld [vmem:[#allocation5 + $0x70] sm:$0xff]   ;;  %v1407_v28 = vld [vmem:[#allocation5 + $0x78] sm:$0xff]   ;;  %p1622_p4 = pnand %p1621_p3, %p1615_p0 }
  0x88   :  { %1294 = vmatprep.subr.bf16.mxu1 %v1388_v9  ;;  %v1404_v25 = vld [vmem:[#allocation5 + $0xf0] sm:$0xff]   ;;  %v1408_v29 = vld [vmem:[#allocation5 + $0xf8] sm:$0xff]   ;;  %v116_v32 = vld [vmem:[#allocation2 + $0x8] sm:$0xff] }
  0x89   :  { %v1405_v26 = vld [vmem:[#allocation5 + $0x30] sm:$0xff]   ;;  %v1409_v30 = vld [vmem:[#allocation5 + $0x38] sm:$0xff]   ;;  %v115_v34 = vld [vmem:[#allocation2] sm:$0xff]  ;;  %v124_v35 = vpack.c.bf16 %v116_v32, %v116_v32 }
  0x8a   :  { %1273 = vmatpush3.bf16.msra.mxu0 %v1389_v10  ;;  %v1406_v27 = vld [vmem:[#allocation5 + $0xb0] sm:$0xff]   ;;  %v1410_v31 = vld [vmem:[#allocation5 + $0xb8] sm:$0xff]   ;;  %v123_v37 = vpack.c.bf16 %v115_v34, %v115_v34  ;;  %v1411_v40 = vld [vmem:[#allocation5 + $0x140] sm:$0xff]  }
  0x8b   :  { %1295 = vmatpush3.bf16.msra.mxu1 %v1390_v11  ;;  %1274 = vmatprep.subr.bf16.mxu0 %v1391_v12  ;;  %v118_v33 = vld [vmem:[#allocation2 + $0x18] sm:$0xff]  ;;  %v117_v38 = vld [vmem:[#allocation2 + $0x10] sm:$0xff]  ;;  %v1412_v41 = vld [vmem:[#allocation5 + $0x1c0] sm:$0xff]  }
  0x8c   :  { %1296 = vmatprep.subr.bf16.mxu1 %v1392_v13  ;;  %v126_v36 = vpack.c.bf16 %v118_v33, %v118_v33  ;;  %v125_v39 = vpack.c.bf16 %v117_v38, %v117_v38  ;;  %682 = vmatprep.mubr.bf16.mxu0 %v124_v35  ;;  %v1413_v42 = vld [vmem:[#allocation5 + $0x100] sm:$0xff]   ;;  %v1415_v44 = vld [vmem:[#allocation5 + $0x148] sm:$0xff]   ;;  %v1419_v48 = vld [vmem:[#allocation5 + $0x150] sm:$0xff]  }
  0x8d   :  { %v1414_v43 = vld [vmem:[#allocation5 + $0x180] sm:$0xff]   ;;  %v1416_v45 = vld [vmem:[#allocation5 + $0x1c8] sm:$0xff]   ;;  %v1420_v49 = vld [vmem:[#allocation5 + $0x1d0] sm:$0xff]  }
  0x8e   :  { %1275 = vmatpush3.bf16.msra.mxu0 %v1393_v14  ;;  %722 = vmatprep.mubr.bf16.mxu1 %v126_v36  ;;  %v1417_v46 = vld [vmem:[#allocation5 + $0x108] sm:$0xff]   ;;  %v1421_v50 = vld [vmem:[#allocation5 + $0x110] sm:$0xff]   ;;  %v1423_v52 = vld [vmem:[#allocation5 + $0x158] sm:$0xff]  }
  0x8f   :  { %1297 = vmatpush3.bf16.msra.mxu1 %v1394_v15  ;;  %1276 = vmatprep.subr.bf16.mxu0 %v1395_v16  ;;  %v1418_v47 = vld [vmem:[#allocation5 + $0x188] sm:$0xff]   ;;  %v1422_v51 = vld [vmem:[#allocation5 + $0x190] sm:$0xff]   ;;  %v1424_v53 = vld [vmem:[#allocation5 + $0x1d8] sm:$0xff]  }
  0x90   :  { %1298 = vmatprep.subr.bf16.mxu1 %v1396_v17  ;;  %v1425_v54 = vld [vmem:[#allocation5 + $0x118] sm:$0xff]   ;;  %v1427_v56 = vld [vmem:[#allocation5 + $0x160] sm:$0xff]   ;;  %v1431_v60 = vld [vmem:[#allocation5 + $0x168] sm:$0xff]   ;;  %v1657_v17 = vmov 0.0  }
  0x91   :  { %v1426_v55 = vld [vmem:[#allocation5 + $0x198] sm:$0xff]   ;;  %v1428_v57 = vld [vmem:[#allocation5 + $0x1e0] sm:$0xff]   ;;  %v1432_v61 = vld [vmem:[#allocation5 + $0x1e8] sm:$0xff]  }
  0x92   :  { %1277 = vmatpush3.bf16.msra.mxu0 %v1397_v18  ;;  %v1429_v58 = vld [vmem:[#allocation5 + $0x120] sm:$0xff]   ;;  %v1433_v62 = vld [vmem:[#allocation5 + $0x128] sm:$0xff]   ;;  %v1435_v0 = vld [vmem:[#allocation5 + $0x170] sm:$0xff]  }
  0x93   :  { %1299 = vmatpush3.bf16.msra.mxu1 %v1398_v19  ;;  %1278 = vmatprep.subr.bf16.mxu0 %v1399_v20  ;;  %v1430_v59 = vld [vmem:[#allocation5 + $0x1a0] sm:$0xff]   ;;  %v1434_v63 = vld [vmem:[#allocation5 + $0x1a8] sm:$0xff]   ;;  %v1436_v1 = vld [vmem:[#allocation5 + $0x1f0] sm:$0xff]  }
  0x94   :  { %1300 = vmatprep.subr.bf16.mxu1 %v1400_v21  ;;  %v1437_v2 = vld [vmem:[#allocation5 + $0x130] sm:$0xff]   ;;  %v1439_v4 = vld [vmem:[#allocation5 + $0x178] sm:$0xff]   ;;  %v120_v8 = vld [vmem:[#allocation2 + $0x28] sm:$0xff] }
  0x95   :  { %v1438_v3 = vld [vmem:[#allocation5 + $0x1b0] sm:$0xff]   ;;  %v1440_v5 = vld [vmem:[#allocation5 + $0x1f8] sm:$0xff]   ;;  %v128_v10 = vpack.c.bf16 %v120_v8, %v120_v8  ;;  %v119_v12 = vld [vmem:[#allocation2 + $0x20] sm:$0xff] }
  0x96   :  { %1279 = vmatpush3.bf16.msra.mxu0 %v1401_v22  ;;  %v1441_v6 = vld [vmem:[#allocation5 + $0x138] sm:$0xff]   ;;  %v121_v13 = vld [vmem:[#allocation2 + $0x30] sm:$0xff]  ;;  %v127_v14 = vpack.c.bf16 %v119_v12, %v119_v12  ;;  %v1443_v16 = vld [vmem:[#allocation8] sm:$0xff]  }
  0x97   :  { %1301 = vmatpush3.bf16.msra.mxu1 %v1402_v23  ;;  %1280 = vmatprep.subr.bf16.mxu0 %v1403_v24  ;;  %v1442_v7 = vld [vmem:[#allocation5 + $0x1b8] sm:$0xff]   ;;  %v129_v15 = vpack.c.bf16 %v121_v13, %v121_v13  ;;  %v873_v18 = vld [vmem:[#allocation11] sm:$0xff] }
  0x98   :  { %1302 = vmatprep.subr.bf16.mxu1 %v1404_v25  ;;  %v122_v9 = vld [vmem:[#allocation2 + $0x38] sm:$0xff]  ;;  %v877_v19 = vld [vmem:[#allocation11 + $0x20] sm:$0xff] }
  0x99   :  { %v130_v11 = vpack.c.bf16 %v122_v9, %v122_v9  ;;  %v874_v20 = vld [vmem:[#allocation11 + $0x8] sm:$0xff]  ;;  %v1256_v21 = vcombine.low %v873_v18, %v877_v19  ;;  %v1257_v22 = vcombine.high %v873_v18, %v877_v19 }
  0x9a   :  { %1281 = vmatpush3.bf16.msra.mxu0 %v1405_v26  ;;  %v878_v23 = vld [vmem:[#allocation11 + $0x28] sm:$0xff] }
  0x9b   :  { %1303 = vmatpush3.bf16.msra.mxu1 %v1406_v27  ;;  %1282 = vmatprep.subr.bf16.mxu0 %v1407_v28  ;;  %v1258_v24 = vcombine.low %v874_v20, %v878_v23  ;;  %v1259_v25 = vcombine.high %v874_v20, %v878_v23  ;;  %v1188_v28 = vld [vmem:[#allocation7] ss:$0 sm:$0xff] }
  0x9c   :  { %1304 = vmatprep.subr.bf16.mxu1 %v1408_v29 }
  0x9e   :  { %1283 = vmatpush3.bf16.msra.mxu0 %v1409_v30 }
  0x9f   :  { %1305 = vmatpush3.bf16.msra.mxu1 %v1410_v31  ;;  %1312 = vmatprep.subr.bf16.mxu0 %v1411_v40 }
  0xa0   :  { %1334 = vmatprep.subr.bf16.mxu1 %v1412_v41 }
  0xa1   :  { %683 = vmatmul.mubr.bf16.vlgmr.msra.gmra.mrb[0].mxu0 %v123_v37 }
  0xa2   :  { %723 = vmatmul.mubr.bf16.vlgmr.msra.gmra.mrb[0].mxu1 %v125_v39  ;;  %1313 = vmatpush3.bf16.msra.mxu0 %v1413_v42 }
  0xa3   :  { %1335 = vmatpush3.bf16.msra.mxu1 %v1414_v43  ;;  %1314 = vmatprep.subr.bf16.mxu0 %v1415_v44 }
  0xa4   :  { %1336 = vmatprep.subr.bf16.mxu1 %v1416_v45  ;;  %762 = vmatprep.mubr.bf16.mxu0 %v128_v10  ;;  %v881_v10 = vld [vmem:[#allocation13] sm:$0xff] }
  0xa5   :  { %802 = vmatprep.mubr.bf16.mxu1 %v130_v11 }
  0xa6   :  { %1315 = vmatpush3.bf16.msra.mxu0 %v1417_v46 }
  0xa7   :  { %1337 = vmatpush3.bf16.msra.mxu1 %v1418_v47  ;;  %1316 = vmatprep.subr.bf16.mxu0 %v1419_v48 }
  0xa8   :  { %1338 = vmatprep.subr.bf16.mxu1 %v1420_v49 }
  0xaa   :  { %1317 = vmatpush3.bf16.msra.mxu0 %v1421_v50 }
  0xab   :  { %1339 = vmatpush3.bf16.msra.mxu1 %v1422_v51  ;;  %1318 = vmatprep.subr.bf16.mxu0 %v1423_v52 }
  0xac   :  { %1340 = vmatprep.subr.bf16.mxu1 %v1424_v53  ;;  %v875_v53 = vld [vmem:[#allocation11 + $0x10] sm:$0xff] }
  0xae   :  { %1319 = vmatpush3.bf16.msra.mxu0 %v1425_v54  ;;  %v879_v54 = vld [vmem:[#allocation11 + $0x30] sm:$0xff] }
  0xaf   :  { %1341 = vmatpush3.bf16.msra.mxu1 %v1426_v55  ;;  %1320 = vmatprep.subr.bf16.mxu0 %v1427_v56  ;;  %v876_v55 = vld [vmem:[#allocation11 + $0x18] sm:$0xff]  ;;  %v1659_v56 = vmov 0  }
  0xb0   :  { %1342 = vmatprep.subr.bf16.mxu1 %v1428_v57  ;;  %v1260_v57 = vcombine.low %v875_v53, %v879_v54 }
  0xb2   :  { %1321 = vmatpush3.bf16.msra.mxu0 %v1429_v58  ;;  %v1261_v58 = vcombine.high %v875_v53, %v879_v54 }
  0xb3   :  { %1343 = vmatpush3.bf16.msra.mxu1 %v1430_v59  ;;  %1322 = vmatprep.subr.bf16.mxu0 %v1431_v60  ;;  %v880_v59 = vld [vmem:[#allocation11 + $0x38] sm:$0xff] }
  0xb4   :  { %1344 = vmatprep.subr.bf16.mxu1 %v1432_v61  ;;  %v1262_v60 = vcombine.low %v876_v55, %v880_v59  ;;  %v1263_v61 = vcombine.high %v876_v55, %v880_v59 }
  0xb6   :  { %1323 = vmatpush3.bf16.msra.mxu0 %v1433_v62  ;;  %v1253_v62 = vld [vmem:[#allocation10] ss:$0 sm:$0xff] }
  0xb7   :  { %1345 = vmatpush3.bf16.msra.mxu1 %v1434_v63  ;;  %1324 = vmatprep.subr.bf16.mxu0 %v1435_v0 }
  0xb8   :  { %1346 = vmatprep.subr.bf16.mxu1 %v1436_v1 }
  0xba   :  { %1325 = vmatpush3.bf16.msra.mxu0 %v1437_v2 }
  0xbb   :  { %1347 = vmatpush3.bf16.msra.mxu1 %v1438_v3  ;;  %1326 = vmatprep.subr.bf16.mxu0 %v1439_v4 }
  0xbc   :  { %1348 = vmatprep.subr.bf16.mxu1 %v1440_v5 }
  0xbe   :  { %1327 = vmatpush3.bf16.msra.mxu0 %v1441_v6  ;;  %v883_v6 = vlaneseq }
  0xbf   :  { %1349 = vmatpush3.bf16.msra.mxu1 %v1442_v7  ;;  %1358 = vmatprep.subr.bf16.mxu0 %v1657_v17 }
  0xc0   :  { %966 = vmatprep.subr.bf16.mxu1 %v1257_v22  ;;  %v884_v7 = vshrl.u32 %v883_v6, 7 }
  0xc1   :  { %763 = vmatmul.mubr.bf16.vlgmr.msra.gmra.mrb[4].mxu0 %v127_v14 }
  0xc2   :  { %803 = vmatmul.mubr.bf16.vlgmr.msra.gmra.mrb[4].mxu1 %v129_v15  ;;  %1359 = vmatpush3.bf16.msra.mxu0 %v1443_v16  ;;  %v885_v8 = vsub.s32 0, %v884_v7  ;;  %v893_v9 = vsub.s32 2, %v884_v7  ;;  %v889_v11 = vsub.s32 1, %v884_v7  ;;  %v897_v12 = vsub.s32 3, %v884_v7 }
  0xc3   :  { %1360 = vmatprep.mubr.msk.bf16.mxu0 %vm1658_vm0, %v1657_v17  ;;  %1007 = vmatprep.subr.bf16.mxu0 %v1259_v25  ;;  %v901_v23 = vsub.s32 4, %v884_v7 }
  0xc4   :  { %967 = vmatpush1.bf16.msra.mxu1 %v1256_v21  ;;  %998 = vmatprep.mubr.bf16.mxu1 %v1659_v56  ;;  %v886_v13 = vrot.slane %v881_v10, %v885_v8  ;;  %v894_v14 = vrot.slane %v881_v10, %v893_v9  ;;  %v890_v15 = vrot.slane %v881_v10, %v889_v11 }
  0xc5   :  { %1048 = vmatprep.subr.bf16.mxu1 %v1261_v58  ;;  %v898_v16 = vrot.slane %v881_v10, %v897_v12 }
 0x174   :  { %v1284_v26 = vpop.f32.mrb[0].mxu0 }
 0x175   :  { %v1306_v27 = vpop.f32.mrb[0].mxu1  ;;  %v1285_v29 = vpop.f32.mrb[1].mxu0 }
 0x176   :  { %v1307_v30 = vpop.f32.mrb[1].mxu1  ;;  %v1286_v31 = vadd.f32 %v1285_v29, %v1284_v26  ;;  %v1287_v33 = vpop.f32.mrb[2].mxu0  ;;  %v905_v29 = vsub.s32 5, %v884_v7 }
 0x177   :  { %v1308_v32 = vadd.f32 %v1307_v30, %v1306_v27  ;;  %v1309_v34 = vpop.f32.mrb[2].mxu1  ;;  %v1288_v35 = vpop.f32.mrb[3].mxu0  ;;  %v913_v30 = vsub.s32 7, %v884_v7 }
 0x178   :  { %v1310_v36 = vpop.f32.mrb[3].mxu1  ;;  %v685_v37 = vadd.f32 %v1286_v31, %v1188_v28 }
 0x17a   :  { %v725_v38 = vadd.f32 %v1308_v32, %v685_v37  ;;  %v902_v37 = vrot.slane %v881_v10, %v901_v23 }
 0x194   :  { %v1328_v39 = vpop.f32.mrb[4].mxu0 }
 0x195   :  { %v1350_v40 = vpop.f32.mrb[4].mxu1  ;;  %v1329_v41 = vpop.f32.mrb[5].mxu0 }
 0x196   :  { %v1330_v42 = vadd.f32 %v1329_v41, %v1328_v39  ;;  %v1351_v43 = vpop.f32.mrb[5].mxu1  ;;  %v1331_v44 = vpop.f32.mrb[6].mxu0  ;;  %v906_v39 = vrot.slane %v881_v10, %v905_v29 }
 0x197   :  { %v1352_v45 = vadd.f32 %v1351_v43, %v1350_v40  ;;  %v1353_v46 = vpop.f32.mrb[6].mxu1  ;;  %v1332_v47 = vpop.f32.mrb[7].mxu0  ;;  %v914_v40 = vrot.slane %v881_v10, %v913_v30 }
 0x198   :  { %v765_v48 = vadd.f32 %v1330_v42, %v725_v38  ;;  %v1354_v49 = vpop.f32.mrb[7].mxu1 }
 0x19a   :  { %v805_v50 = vadd.f32 %v1352_v45, %v765_v48 }
 0x19c   :  { %v810_v51 = vmax.f32 %v805_v50, 0.0 }
 0x19e   :  { %v811_v52 = vpack.c.bf16 %v810_v51, %v810_v51 }
 0x1a0   :  { %1361 = vmatmul.mubr.msk.bf16.vlgmr.msra.gmra.mrb[8].mxu0 %vm827_vm1, %v811_v52 }
 0x1a1   :  { %1008 = vmatpush1.bf16.msra.mxu0 %v1258_v24  ;;  %1039 = vmatprep.mubr.bf16.mxu0 %v1659_v56  ;;  %v909_v24 = vsub.s32 6, %v884_v7 }
 0x1a2   :  { %1089 = vmatprep.subr.bf16.mxu0 %v1263_v61 }
 0x1a3   :  { %v910_v38 = vrot.slane %v881_v10, %v909_v24 }
 0x273   :  { %v865_v63 = vpop.f32.mrb[8].mxu0 }
 0x274   :  { %v866_v0 = vadd.f32 %v1253_v62, %v865_v63  ;;  %v1362_v1 = vpop.f32.mrb[9].mxu0 }
 0x275   :  { %v868_v2 = vpop.f32.mrb[10].mxu0 }
 0x276   :  { %v871_v3 = vmax.f32 %v866_v0, 0.0  ;;  %v1363_v4 = vpop.f32.mrb[11].mxu0 }
 0x278   :  { %v872_v5 = vpack.c.bf16 %v871_v3, %v871_v3 }
 0x27a   :  { %1264 = vmatmul.mubr.msk.bf16.vlgmr.msra.gmra.mrb[8].mxu1 %vm827_vm1, %v872_v5  ;;  %1265 = vmatmul.mubr.msk.bf16.vlgmr.msra.gmra.mrb[12].mxu0 %vm827_vm1, %v872_v5 }
 0x27b   :  { %1049 = vmatpush1.bf16.msra.mxu1 %v1260_v57  ;;  %1090 = vmatpush1.bf16.msra.mxu0 %v1262_v60 }
 0x27c   :  { %1080 = vmatprep.mubr.bf16.mxu1 %v1659_v56  ;;  %1121 = vmatprep.mubr.bf16.mxu0 %v1659_v56 }
 0x282   :  { %1266 = vmatmul.mubr.msk.bf16.vlgmr.msra.gmra.mrb[12].mxu1 %vm827_vm1, %v872_v5  ;;  %1267 = vmatmul.mubr.msk.bf16.vlgmr.msra.gmra.mrb[16].mxu0 %vm827_vm1, %v872_v5 }
 0x34d   :  { %v1000_v17 = vpop.f32.mrb[8].mxu1  ;;  %v1041_v18 = vpop.f32.mrb[12].mxu0 }
 0x34e   :  { %v1001_v19 = vadd.f32 %v1000_v17, %v886_v13  ;;  %v1042_v20 = vadd.f32 %v1041_v18, %v894_v14  ;;  %v1002_v21 = vpop.f32.mrb[9].mxu1  ;;  %v1043_v22 = vpop.f32.mrb[13].mxu0 }
 0x34f   :  { %v1003_v25 = vadd.f32 %v1002_v21, %v890_v15  ;;  %v1044_v26 = vadd.f32 %v1043_v22, %v898_v16  ;;  %v1004_v27 = vpop.f32.mrb[10].mxu1  ;;  %v1045_v28 = vpop.f32.mrb[14].mxu0 }
 0x350   :  { %v1130_v31 = vmul.f32 0.5, %v1001_v19  ;;  %v1132_v32 = vmul.f32 0.5, %v1042_v20  ;;  %v1005_v33 = vpop.f32.mrb[11].mxu1  ;;  %v1046_v34 = vpop.f32.mrb[15].mxu0 }
 0x351   :  { %v1131_v35 = vmul.f32 0.5, %v1003_v25  ;;  %v1133_v36 = vmul.f32 0.5, %v1044_v26 }
 0x352   :  { %1444 = vtanh.f32 %v1130_v31 }
 0x353   :  { %1446 = vtanh.f32 %v1132_v32 }
 0x354   :  { %1448 = vtanh.f32 %v1131_v35 }
 0x355   :  { %1450 = vtanh.f32 %v1133_v36  ;;  %v1082_v41 = vpop.f32.mrb[12].mxu1  ;;  %v1123_v42 = vpop.f32.mrb[16].mxu0 }
 0x356   :  { %v1083_v43 = vadd.f32 %v1082_v41, %v902_v37  ;;  %v1124_v44 = vadd.f32 %v1123_v42, %v910_v38  ;;  %v1084_v45 = vpop.f32.mrb[13].mxu1  ;;  %v1125_v46 = vpop.f32.mrb[17].mxu0 }
 0x357   :  { %v1085_v47 = vadd.f32 %v1084_v45, %v906_v39  ;;  %v1126_v48 = vadd.f32 %v1125_v46, %v914_v40  ;;  %v1086_v49 = vpop.f32.mrb[14].mxu1  ;;  %v1127_v50 = vpop.f32.mrb[18].mxu0 }
 0x358   :  { %v1134_v51 = vmul.f32 0.5, %v1083_v43  ;;  %v1136_v52 = vmul.f32 0.5, %v1124_v44  ;;  %v1087_v53 = vpop.f32.mrb[15].mxu1  ;;  %v1128_v54 = vpop.f32.mrb[19].mxu0 }
 0x359   :  { %v1135_v55 = vmul.f32 0.5, %v1085_v47  ;;  %v1137_v56 = vmul.f32 0.5, %v1126_v48 }
 0x35a   :  { %1452 = vtanh.f32 %v1134_v51 }
 0x35b   :  { %1454 = vtanh.f32 %v1136_v52 }
 0x35c   :  { %v1445_v57 = vpop.eup %1444  ;;  %1456 = vtanh.f32 %v1135_v55 }
 0x35d   :  { %v1447_v58 = vpop.eup %1446  ;;  %v1146_v59 = vmul.f32 0.5, %v1445_v57  ;;  %1458 = vtanh.f32 %v1137_v56 }
 0x35e   :  { %v1449_v60 = vpop.eup %1448  ;;  %v1148_v61 = vmul.f32 0.5, %v1447_v58 }
 0x35f   :  { %v1451_v62 = vpop.eup %1450  ;;  %v1154_v63 = vadd.f32 0.5, %v1146_v59  ;;  %v1147_v0 = vmul.f32 0.5, %v1449_v60 }
 0x360   :  { %v1156_v1 = vadd.f32 0.5, %v1148_v61  ;;  %v1149_v2 = vmul.f32 0.5, %v1451_v62 }
 0x361   :  { %1162 = vst [vmem:[#allocation14] sm:$0xff] %v1154_v63  ;;  %v1155_v3 = vadd.f32 0.5, %v1147_v0 }
 0x362   :  { %1164 = vst [vmem:[#allocation14 + $0x10] sm:$0xff] %v1156_v1  ;;  %v1157_v4 = vadd.f32 0.5, %v1149_v2 }
 0x363   :  { %1163 = vst [vmem:[#allocation14 + $0x8] sm:$0xff] %v1155_v3 }
 0x364   :  { %v1453_v5 = vpop.eup %1452  ;;  %1165 = vst [vmem:[#allocation14 + $0x18] sm:$0xff] %v1157_v4 }
 0x365   :  { %v1455_v6 = vpop.eup %1454  ;;  %v1150_v7 = vmul.f32 0.5, %v1453_v5 }
 0x366   :  { %v1457_v8 = vpop.eup %1456  ;;  %v1152_v9 = vmul.f32 0.5, %v1455_v6 }
 0x367   :  { %v1459_v10 = vpop.eup %1458  ;;  %v1158_v11 = vadd.f32 0.5, %v1150_v7  ;;  %v1151_v12 = vmul.f32 0.5, %v1457_v8 }
 0x368   :  { %v1160_v13 = vadd.f32 0.5, %v1152_v9  ;;  %v1153_v14 = vmul.f32 0.5, %v1459_v10 }
 0x369   :  { %1166 = vst [vmem:[#allocation14 + $0x20] sm:$0xff] %v1158_v11  ;;  %v1159_v15 = vadd.f32 0.5, %v1151_v12 }
 0x36a   :  { %1168 = vst [vmem:[#allocation14 + $0x30] sm:$0xff] %v1160_v13  ;;  %v1161_v16 = vadd.f32 0.5, %v1153_v14 }
 0x36b   :  { %1167 = vst [vmem:[#allocation14 + $0x28] sm:$0xff] %v1159_v15 }
 0x36c   :  { %1169 = vst [vmem:[#allocation14 + $0x38] sm:$0xff] %v1161_v16 }
 0x36d   :  { %1625 = shalt.err (!%p1622_p4)
}
 0x36e   :  { %s1626_s12 = scalar_lea.hbm %s1809_s7, 1024 }
 0x36f   :  { %p1627_p5 = scmp.ne.s32.totalorder %s1809_s7, %s1626_s12  ;;  %p1630_p6 = scmp.lt.u32.totalorder %s1626_s12, %s1809_s7 }
 0x371   :  { %p1632_p7 = pnand %p1630_p6, %p1627_p5 }
 0x373   :  { %1635 = shalt.err (!%p1632_p7)
}
 0x374   :  { %1179 = dma.vmem_to_hbm [thread:$0]  %s1177_s14, 1024, %s1809_s7, [#allocation4]  }
 0x375   :  { %1644 = dma.done.wait [#allocation4], 1024  }
 0x376   :  { %1645 = vsyncadd [#allocation4], 4294966272 }
 0x377   :  { %1183 = vsyncpa [#allocation3], 1 }
 0x378   :  { %1184 = vsyncpa [#allocation6], 1 }
 0x379   :  { %1185 = vsyncpa [#allocation9], 1 }
 0x37a   :  { %1186 = vsyncpa [#allocation12], 1 }
 0x37b   :  { %1187 = vsyncpa [#allocation4], 1 }

</bundles_post_ra>
